<compile_context>
chip_gen: v7x
topology: tpu7x:2x2x1
jax: 0.10.0
libtpu: 0.0.40
codegen_flags: <defaults>
</compile_context>

<pallas_src>
import functools

import jax
import jax.numpy as jnp
from jax.experimental import pallas as pl
from jax.experimental.pallas import tpu as pltpu

LANE = 128  # TPU lane width (batch tile granularity in the transposed layout)


def _round_up(n, m):
    return ((n + m - 1) // m) * m


def dqn_kernel(xT_ref, w1t_ref, b1_ref, w2t_ref, b2_ref, o_ref):
    # fc1 (transposed): (H, S) @ (S, TB) + (H, 1) -> relu         => (H, TB)
    h = jnp.dot(w1t_ref[...], xT_ref[...], preferred_element_type=jnp.float32)
    h = jnp.maximum(h + b1_ref[...], 0.0)
    # fc2 (transposed): (A, H) @ (H, TB) + (A, 1)                 => (A, TB)
    y = jnp.dot(w2t_ref[...], h, preferred_element_type=jnp.float32)
    o_ref[...] = (y + b2_ref[...]).astype(o_ref.dtype)


@functools.partial(jax.jit, static_argnames=("block_batch",))
def dqn_forward(x, w1, b1, w2, b2, *, block_batch=4096):
    """2-layer DQN MLP.

    x : (B, S) float32
    w1: (S, H), b1: (H,)   -- fc1 params, weight stored as (in, out)
    w2: (H, A), b2: (A,)   -- fc2 params, weight stored as (in, out)
    Returns (B, A) float32 == relu(x @ w1 + b1) @ w2 + b2.
    """
    B, S = x.shape
    H = w1.shape[1]
    A = w2.shape[1]

    # --- Transposed layout: batch on the lane axis. -------------------------
    xT = x.T                      # (S, B)
    w1t = w1.T                    # (H, S)   resident in VMEM
    w2t = w2.T                    # (A, H)   resident in VMEM
    b1c = b1.reshape(H, 1)        # (H, 1)   broadcasts across lanes
    b2c = b2.reshape(A, 1)        # (A, 1)

    # --- Batch tiling: lane-aligned tile, padded batch, 1-D grid. -----------
    TB = min(block_batch, _round_up(B, LANE))
    TB = _round_up(TB, LANE)
    B_pad = _round_up(B, TB)
    if B_pad != B:
        xT = jnp.pad(xT, ((0, 0), (0, B_pad - B)))
    grid = (pl.cdiv(B_pad, TB),)

    flops = 2 * B_pad * (S * H + H * A)
    bytes_accessed = 4 * (S * B_pad + H * S + H + A * H + A + A * B_pad)

    outT = pl.pallas_call(
        dqn_kernel,
        out_shape=jax.ShapeDtypeStruct((A, B_pad), jnp.float32),
        grid=grid,
        in_specs=[
            pl.BlockSpec((S, TB), lambda i: (0, i)),   # x^T: tiled on batch (lanes)
            pl.BlockSpec((H, S), lambda i: (0, 0)),    # w1^T: resident
            pl.BlockSpec((H, 1), lambda i: (0, 0)),    # b1:   resident
            pl.BlockSpec((A, H), lambda i: (0, 0)),    # w2^T: resident
            pl.BlockSpec((A, 1), lambda i: (0, 0)),    # b2:   resident
        ],
        out_specs=pl.BlockSpec((A, TB), lambda i: (0, i)),
        compiler_params=pltpu.CompilerParams(
            dimension_semantics=("parallel",),   # shard batch across TCs (v7x)
        ),
        cost_estimate=pl.CostEstimate(
            flops=flops, transcendentals=0, bytes_accessed=bytes_accessed),
    )(xT, w1t, b1c, w2t, b2c)

    # Back to (B, A); strip batch padding outside the kernel.
    return outT.T[:B, :]


def init_linear_params(key, in_features, out_features):
    """Deterministic init mimicking torch.nn.Linear default (uniform +-1/sqrt(fan_in))."""
    kw, kb = jax.random.split(key)
    bound = 1.0 / jnp.sqrt(jnp.float32(in_features))
    # Stored as (in_features, out_features) - transposed w.r.t. PyTorch storage.
    w = jax.random.uniform(kw, (in_features, out_features), jnp.float32, -bound, bound)
    b = jax.random.uniform(kb, (out_features,), jnp.float32, -bound, bound)
    return w, b


if __name__ == "__main__":
    key = jax.random.PRNGKey(0)
    k_x, k_fc1, k_fc2 = jax.random.split(key, 3)

    # Small shapes consistent with the module: batch=2, state_size=8,
    # hidden=16 (fixed by the module), action_size=4.
    batch, state_size, hidden, action_size = 2, 8, 16, 4

    x = jax.random.normal(k_x, (batch, state_size), dtype=jnp.float32)
    w1, b1 = init_linear_params(k_fc1, state_size, hidden)
    w2, b2 = init_linear_params(k_fc2, hidden, action_size)

    out = dqn_forward(x, w1, b1, w2, b2)
    out = jax.block_until_ready(out)

    # Reference check in plain JAX (same math as the PyTorch forward).
    ref = jnp.maximum(x @ w1 + b1, 0.0) @ w2 + b2
    assert out.shape == (batch, action_size)
    assert jnp.allclose(out, ref, atol=1e-5, rtol=1e-5)

    print("KERNEL_OK")
</pallas_src>

<mosaic_0001>
module attributes {stable_mosaic.version = 11 : i64} {
  func.func @dqn_kernel(%arg0: i32, %arg1: memref<8x128xf32, #tpu.memory_space<vmem>>, %arg2: memref<16x8xf32, #tpu.memory_space<vmem>>, %arg3: memref<16x1xf32, #tpu.memory_space<vmem>>, %arg4: memref<4x16xf32, #tpu.memory_space<vmem>>, %arg5: memref<4x1xf32, #tpu.memory_space<vmem>>, %arg6: memref<4x128xf32, #tpu.memory_space<vmem>>) attributes {dimension_semantics = [#tpu.dimension_semantics<parallel>], iteration_bounds = array<i64: 1>, scalar_prefetch = 0 : i64, scratch_operands = 0 : i64, tpu.core_type = #tpu.core_type<tc>, window_params = [{transform_indices = @transform_0, window_bounds = array<i64: 8, 128>}, {pipeline_mode = #tpu.pipeline_mode<synchronous>, transform_indices = @transform_1, window_bounds = array<i64: 16, 8>}, {pipeline_mode = #tpu.pipeline_mode<synchronous>, transform_indices = @transform_2, window_bounds = array<i64: 16, 1>}, {pipeline_mode = #tpu.pipeline_mode<synchronous>, transform_indices = @transform_3, window_bounds = array<i64: 4, 16>}, {pipeline_mode = #tpu.pipeline_mode<synchronous>, transform_indices = @transform_4, window_bounds = array<i64: 4, 1>}, {transform_indices = @transform_5, window_bounds = array<i64: 4, 128>}]} {
    %c0 = arith.constant 0 : index
    %c0_0 = arith.constant 0 : index
    %0 = vector.load %arg2[%c0, %c0_0] : memref<16x8xf32, #tpu.memory_space<vmem>>, vector<16x8xf32>
    %c0_1 = arith.constant 0 : index
    %c0_2 = arith.constant 0 : index
    %1 = vector.load %arg1[%c0_1, %c0_2] : memref<8x128xf32, #tpu.memory_space<vmem>>, vector<8x128xf32>
    %cst = arith.constant dense<0.000000e+00> : vector<16x128xf32>
    %2 = tpu.matmul %0, %1, %cst {dimension_numbers = #tpu.dot_dimension_numbers<[1], [0], [0], [1], [0, 0, 1, 1], [], []>} : vector<16x8xf32>, vector<8x128xf32>, vector<16x128xf32> -> vector<16x128xf32>
    %c0_3 = arith.constant 0 : index
    %c0_4 = arith.constant 0 : index
    %3 = vector.load %arg3[%c0_3, %c0_4] : memref<16x1xf32, #tpu.memory_space<vmem>>, vector<16x1xf32>
    %4 = vector.broadcast %3 : vector<16x1xf32> to vector<16x128xf32>
    %5 = arith.addf %2, %4 : vector<16x128xf32>
    %cst_5 = arith.constant 0.000000e+00 : f32
    %6 = vector.broadcast %cst_5 : f32 to vector<16x128xf32>
    %7 = arith.maximumf %5, %6 : vector<16x128xf32>
    %c0_6 = arith.constant 0 : index
    %c0_7 = arith.constant 0 : index
    %8 = vector.load %arg4[%c0_6, %c0_7] : memref<4x16xf32, #tpu.memory_space<vmem>>, vector<4x16xf32>
    %cst_8 = arith.constant dense<0.000000e+00> : vector<4x128xf32>
    %9 = tpu.matmul %8, %7, %cst_8 {dimension_numbers = #tpu.dot_dimension_numbers<[1], [0], [0], [1], [0, 0, 1, 1], [], []>} : vector<4x16xf32>, vector<16x128xf32>, vector<4x128xf32> -> vector<4x128xf32>
    %c0_9 = arith.constant 0 : index
    %c0_10 = arith.constant 0 : index
    %10 = vector.load %arg5[%c0_9, %c0_10] : memref<4x1xf32, #tpu.memory_space<vmem>>, vector<4x1xf32>
    %11 = vector.broadcast %10 : vector<4x1xf32> to vector<4x128xf32>
    %12 = arith.addf %9, %11 : vector<4x128xf32>
    %c0_11 = arith.constant 0 : index
    %c0_12 = arith.constant 0 : index
    %13 = vector.load %arg6[%c0_11, %c0_12] : memref<4x128xf32, #tpu.memory_space<vmem>>, vector<4x128xf32>
    tpu.vector_store %arg6[%c0_11, %c0_12], %12 {strides = array<i32>} : memref<4x128xf32, #tpu.memory_space<vmem>>, vector<4x128xf32>,
    return
  }
  func.func @transform_0(%arg0: i32) -> (i32, i32) {
    %c0_i32 = arith.constant 0 : i32
    %c0_i32_0 = arith.constant 0 : i32
    return %c0_i32, %arg0 : i32, i32
  }
  func.func @transform_1(%arg0: i32) -> (i32, i32) {
    %c0_i32 = arith.constant 0 : i32
    %c0_i32_0 = arith.constant 0 : i32
    %c0_i32_1 = arith.constant 0 : i32
    return %c0_i32, %c0_i32_0 : i32, i32
  }
  func.func @transform_2(%arg0: i32) -> (i32, i32) {
    %c0_i32 = arith.constant 0 : i32
    %c0_i32_0 = arith.constant 0 : i32
    %c0_i32_1 = arith.constant 0 : i32
    return %c0_i32, %c0_i32_0 : i32, i32
  }
  func.func @transform_3(%arg0: i32) -> (i32, i32) {
    %c0_i32 = arith.constant 0 : i32
    %c0_i32_0 = arith.constant 0 : i32
    %c0_i32_1 = arith.constant 0 : i32
    return %c0_i32, %c0_i32_0 : i32, i32
  }
  func.func @transform_4(%arg0: i32) -> (i32, i32) {
    %c0_i32 = arith.constant 0 : i32
    %c0_i32_0 = arith.constant 0 : i32
    %c0_i32_1 = arith.constant 0 : i32
    return %c0_i32, %c0_i32_0 : i32, i32
  }
  func.func @transform_5(%arg0: i32) -> (i32, i32) {
    %c0_i32 = arith.constant 0 : i32
    %c0_i32_0 = arith.constant 0 : i32
    return %c0_i32, %arg0 : i32, i32
  }
}

</mosaic_0001>

<bundles_post_ra>
// kernel: dqn_forward.1
= control target key start
LH: loop header
LB: loop body
LE: loop exit
PB: predicated region body
PF: predicated region fallthrough
CT: control target
= control target key end

     0   :  { %vm35_vm0 = vcmask 64512   ;;  %v235_v3 = vmov 0   ;;  %v236_v6 = vmov 0.0|0.0   ;;  %vm237_vm1 = vmmov 0   ;;  %s293_s0 = inlined_call_operand.vmem [shape: f32[8,128], index: 0, kind: input, shape index: {}]   ;;  %s294_s1 = inlined_call_operand.vmem [shape: f32[16,8], index: 1, kind: input, shape index: {}]   ;;  %s295_s2 = inlined_call_operand.vmem [shape: f32[16,1], index: 2, kind: input, shape index: {}]   ;;  %s296_s4 = inlined_call_operand.vmem [shape: f32[4,1], index: 4, kind: input, shape index: {}]   ;;  %s297_s3 = inlined_call_operand.vmem [shape: f32[4,16], index: 3, kind: input, shape index: {}]   ;;  %s298_s5 = inlined_call_operand.vmem [shape: f32[4,128], index: 5, kind: output, shape index: {}]  }
   0x1   :  { %v22_v0 = vld [vmem:[%s293_s0] sm:$0xff]  ;;  %v21_v2 = vld [vmem:[%s294_s1 + $0x8] sm:$0xff]  ;;  %233 = vset.pattern.permute.xlu0 %v235_v3  ;;  %234 = vset.pattern.permute.xlu1 %v235_v3  ;;  %v238_v7 = vmov 0.0   ;;  %vm126_vm2 = vcmask 130048  }
   0x2   :  { %v20_v1 = vld [vmem:[%s294_s1] sm:$0xff]  ;;  %214 = vmatprep.subr.mxu0 %v22_v0  ;;  %v24_v5 = vld [vmem:[%s295_s2 + $0x8] sm:$0xff]  ;;  %226 = vmatprep.subr.bf16.mxu1 %v236_v6 }
   0x3   :  { %216 = vmatprep.mubr.msk.f32.mxu0 %vm35_vm0, %v20_v1  ;;  %v23_v4 = vld [vmem:[%s295_s2] sm:$0xff]  ;;  %215 = vmatpush3.msra.mxu0 %v22_v0 }
   0x4   :  { %27 = vperm.xlu0 %233, %v23_v4   ;;  %217 = vmatmul.mubr.msk.f32.vlgmr.msra.gmra.mrb[0].mxu0 %vm35_vm0, %v21_v2  ;;  %v120_v8 = vld [vmem:[%s296_s4] sm:$0xf] }
   0x5   :  { %223 = vmatprep.mubr.msk.f32.mxu1 %vm237_vm1, %v238_v7  ;;  %123 = vperm.xlu1 %234, %v120_v8   ;;  %v119_v18 = vld [vmem:[%s297_s3] sm:$0xf] }
   0x8   :  { %32 = vperm.xlu0 %233, %v24_v5  }
  0x83   :  { %v28_v9 = vpop.permute.xlu0 %27 }
  0x84   :  { %v124_v19 = vpop.permute.xlu1 %123 }
  0x87   :  { %v33_v10 = vpop.permute.xlu0 %32 }
  0xd7   :  { %v218_v11 = vpop.f32.mrb[0].mxu0 }
  0xd8   :  { %v114_v12 = vadd.f32 %v218_v11, %v33_v10  ;;  %v108_v13 = vpop.f32.mrb[1].mxu0 }
  0xd9   :  { %v109_v14 = vadd.f32 %v108_v13, %v28_v9 }
  0xda   :  { %v118_v15 = vmax.f32 %v114_v12, 0.0 }
  0xdb   :  { %v117_v16 = vmax.f32 %v109_v14, 0.0 }
  0xdd   :  { %v227_v17 = vpack.c.bf16 %v118_v15, %v117_v16 }
  0xdf   :  { %228 = vmatpush3.bf16.msra.mxu1 %v227_v17 }
  0xe2   :  { %224 = vmatmul.mubr.msk.f32.vlgmr.msra.gmra.mrb[0].mxu1 %vm126_vm2, %v119_v18 }
 0x1b5   :  { %v196_v20 = vpop.f32.mrb[0].mxu1 }
 0x1b6   :  { %v197_v21 = vadd.f32 %v196_v20, %v124_v19  ;;  %v225_v22 = vpop.f32.mrb[1].mxu1 }
 0x1b8   :  { %200 = vst [vmem:[%s298_s5] sm:$0xf] %v197_v21 }

</bundles_post_ra>
